<compile_context>
chip_gen: v7x
topology: tpu7x:2x2x1
jax: 0.10.0
libtpu: 0.0.40
codegen_flags: <defaults>
</compile_context>

<pallas_src>
import functools

import jax
import jax.numpy as jnp
from jax import lax
from jax.experimental import pallas as pl
from jax.experimental.pallas import tpu as pltpu

EDGES_PER_ATOM = 16
EDGE_DIM = 16
HIDDEN_SIZE = 16
NODE_DIM = 3 * HIDDEN_SIZE        # 48
EDGE_HIDDEN = 32                  # edge_hidden_dim
HIDDEN_LAYERS = 2
FFN_HIDDEN = 2 * NODE_DIM         # 96
OUT_DIM = 2                       # out_repr = Repr([0], 2)
QKV_PAD = 128                     # Q/K/V each padded to one 128-lane tile


# --------------------------- fused forward kernel ----------------------------
def fused_kernel(h0_ref, bias_ref, wqkv_ref, wo_ref, w1_ref, b1_ref,
                 w2_ref, b2_ref, wout_ref, bout_ref, pool_ref, out_ref):
    f32 = jnp.float32
    bf16 = jnp.bfloat16

    h = h0_ref[...]                               # [N, 48] f32, resident in VMEM

    for l in range(HIDDEN_LAYERS):                # static unroll over the 2 layers
        # Fused, lane-aligned QKV projection: one [N,48]x[48,384] MXU pass.
        # 1/sqrt(48) is already folded into the Q columns of wqkv.
        qkv = jnp.dot(h.astype(bf16), wqkv_ref[l], preferred_element_type=f32)
        q = qkv[:, 0 * QKV_PAD:1 * QKV_PAD]       # 128-lane-aligned tile slices,
        k = qkv[:, 1 * QKV_PAD:2 * QKV_PAD]       # cols 48..127 of each block are 0
        v = qkv[:, 2 * QKV_PAD:3 * QKV_PAD]

        # Attention logits: contract the last dims directly (no explicit k.T);
        # zero-padded lanes contribute nothing.  bias_ref[l] already contains the
        # hoisted edge-MLP bias plus the -1e9 non-KNN mask.
        logits = lax.dot_general(
            q.astype(bf16), k.astype(bf16),
            dimension_numbers=(((1,), (1,)), ((), ())),
            preferred_element_type=f32) + bias_ref[l]              # [N, N]

        m = jnp.max(logits, axis=-1, keepdims=True)
        p = jnp.exp(logits - m)                   # un-normalized probabilities
        denom = jnp.sum(p, axis=-1, keepdims=True)

        # Deferred softmax normalization: scale the narrow [N,48] Wo output with
        # the EUP reciprocal instead of multiplying the [N,N] probability matrix.
        # (Set approx=False if bit-level parity with an f32 reference matters.)
        msg = jnp.dot(p.astype(bf16), v.astype(bf16),
                      preferred_element_type=f32)                  # [N, 128]
        upd = jnp.dot(msg.astype(bf16), wo_ref[l],
                      preferred_element_type=f32)                  # [N, 48]
        h1 = h + upd * pl.reciprocal(denom, approx=True)

        # Feed-forward block with residual.
        ff = jnp.maximum(
            jnp.dot(h1.astype(bf16), w1_ref[l], preferred_element_type=f32)
            + b1_ref[l], 0.0)
        ff = jnp.dot(ff.astype(bf16), w2_ref[l],
                     preferred_element_type=f32) + b2_ref[l]
        h = h1 + ff

    # Per-residue mean pooling first (linear, commutes with the readout), then the
    # tiny [48,2] readout on the pooled matrix.
    pooled = jnp.dot(pool_ref[...].astype(bf16), h.astype(bf16),
                     preferred_element_type=f32)                   # [R, 48]
    out_ref[...] = (jnp.dot(pooled.astype(bf16), wout_ref[...],
                            preferred_element_type=f32) + bout_ref[...])


def fused_forward(h0, bias, wqkv, wo, w1, b1, w2, b2, wout, bout, pool):
    n = h0.shape[0]
    r = pool.shape[0]
    args = (h0, bias, wqkv, wo, w1, b1, w2, b2, wout, bout, pool)
    # Explicit VMEM budget: bias slabs + a few transient [N,N] f32 tiles + row
    # tensors, with 2x headroom; capped at 64 MiB so the same budget fits v7x.
    est = 4 * (HIDDEN_LAYERS + 4) * n * n + 8192 * n + (1 << 20)
    vmem_bytes = int(min(64 * 1024 * 1024, max(2 * est, 16 * 1024 * 1024)))
    return pl.pallas_call(
        fused_kernel,
        out_shape=jax.ShapeDtypeStruct((r, OUT_DIM), jnp.float32),
        # No grid: single invocation, everything resident once (no double-buffer).
        in_specs=[pl.BlockSpec(memory_space=pltpu.MemorySpace.VMEM)] * len(args),
        out_specs=pl.BlockSpec(memory_space=pltpu.MemorySpace.VMEM),
        compiler_params=pltpu.CompilerParams(vmem_limit_bytes=vmem_bytes),
    )(*args)


# --------------------------------- JAX glue ----------------------------------
def sinusoidal_embedding(n, dim):
    pos = jnp.arange(n, dtype=jnp.float32)[:, None]
    i = jnp.arange(dim // 2, dtype=jnp.float32)[None, :]
    freq = jnp.power(10000.0, -2.0 * i / dim)
    ang = pos * freq
    return jnp.stack([jnp.sin(ang), jnp.cos(ang)], axis=-1).reshape(n, dim)


def radial_basis_functions(dist, num=EDGE_DIM, cutoff=10.0):
    centers = jnp.linspace(0.0, cutoff, num)
    gamma = (num / cutoff) ** 2
    return jnp.exp(-gamma * (dist[..., None] - centers) ** 2)


def edge_attention_bias(coords, we1, be1, we2):
    """Both layers' additive attention biases, hoisted out of the layer loop.
    The edge MLP runs only on the 16*N real KNN edges; non-edges get -1e9."""
    n = coords.shape[0]
    diff = coords[:, None, :] - coords[None, :, :]
    dist = jnp.sqrt(jnp.sum(diff * diff, axis=-1) + 1e-12)          # [N, N]
    # polymer.connect(EDGES_PER_ATOM): 16 nearest neighbours, no self-loop.
    _, idx = lax.top_k(-(dist + jnp.eye(n, dtype=dist.dtype) * 1e9),
                       EDGES_PER_ATOM)                              # [N, 16]
    d_knn = jnp.take_along_axis(dist, idx, axis=1)                  # [N, 16]
    e_knn = radial_basis_functions(d_knn)                           # [N, 16, 16]
    # Both layers' edge MLPs evaluated in one fused pass on the real edges only.
    eh = jnp.maximum(
        jnp.einsum("nkd,ldc->lnkc", e_knn, we1) + be1[:, None, None, :], 0.0)
    b_knn = jnp.einsum("lnkc,lc->lnk", eh, we2)                     # [L, N, 16]
    bias = jnp.full((HIDDEN_LAYERS, n, n), -1e9, jnp.float32)
    rows = jnp.arange(n)[:, None]
    return bias.at[:, rows, idx].set(b_knn)                         # [L, N, N]


def make_residue_pool(residue_ids, num_residues):
    # polymer.reduce(..., Property.RESIDUE) as a normalized one-hot pooling matrix
    onehot = (residue_ids[None, :] == jnp.arange(num_residues)[:, None])
    onehot = onehot.astype(jnp.float32)
    counts = jnp.maximum(jnp.sum(onehot, axis=1, keepdims=True), 1.0)
    return onehot / counts                                           # [R, N]


def prepare_attention_weights(params):
    """Fold 1/sqrt(48) into Q and pad Q/K/V/O to 128-lane-aligned blocks."""
    scale = 1.0 / jnp.sqrt(jnp.float32(NODE_DIM))
    wqkv = jnp.zeros((HIDDEN_LAYERS, NODE_DIM, 3 * QKV_PAD), jnp.float32)
    wqkv = wqkv.at[:, :, 0:NODE_DIM].set(params["wq"] * scale)
    wqkv = wqkv.at[:, :, QKV_PAD:QKV_PAD + NODE_DIM].set(params["wk"])
    wqkv = wqkv.at[:, :, 2 * QKV_PAD:2 * QKV_PAD + NODE_DIM].set(params["wv"])
    wo = jnp.zeros((HIDDEN_LAYERS, QKV_PAD, NODE_DIM), jnp.float32)
    wo = wo.at[:, :NODE_DIM, :].set(params["wo"])
    return wqkv.astype(jnp.bfloat16), wo.astype(jnp.bfloat16)


def init_params(key):
    keys = iter(jax.random.split(key, 32))
    nrm = lambda k, shape, s=0.1: jax.random.normal(k, shape, jnp.float32) * s
    L = HIDDEN_LAYERS
    return {
        "elem_emb": nrm(next(keys), (5, HIDDEN_SIZE)),
        "res_emb": nrm(next(keys), (4, HIDDEN_SIZE)),
        "pos_w": nrm(next(keys), (1, HIDDEN_SIZE)),
        "pos_b": jnp.zeros((1, HIDDEN_SIZE), jnp.float32),
        # per-layer transformer weights stacked on a leading axis of size L
        "wq": nrm(next(keys), (L, NODE_DIM, NODE_DIM)),
        "wk": nrm(next(keys), (L, NODE_DIM, NODE_DIM)),
        "wv": nrm(next(keys), (L, NODE_DIM, NODE_DIM)),
        "wo": nrm(next(keys), (L, NODE_DIM, NODE_DIM)),
        "we1": nrm(next(keys), (L, EDGE_DIM, EDGE_HIDDEN)),
        "be1": jnp.zeros((L, EDGE_HIDDEN), jnp.float32),
        "we2": nrm(next(keys), (L, EDGE_HIDDEN)),
        "w1": nrm(next(keys), (L, NODE_DIM, FFN_HIDDEN)),
        "b1": jnp.zeros((L, 1, FFN_HIDDEN), jnp.float32),
        "w2": nrm(next(keys), (L, FFN_HIDDEN, NODE_DIM)),
        "b2": jnp.zeros((L, 1, NODE_DIM), jnp.float32),
        "wout": nrm(next(keys), (NODE_DIM, OUT_DIM)),
        "bout": jnp.zeros((1, OUT_DIM), jnp.float32),
    }


@functools.partial(jax.jit, static_argnames=("num_residues",))
def geometric_model_rna_forward(params, coords, elements, residues, positions,
                                residue_ids, num_residues):
    n = coords.shape[0]

    # --- encode glue: embedding gathers + Linear(1,16) + concat + sinusoid add ---
    elem_rows = jnp.take(params["elem_emb"], elements, axis=0)
    res_rows = jnp.take(params["res_emb"], residues, axis=0)
    pos_emb = positions[:, None].astype(jnp.float32) * params["pos_w"] + params["pos_b"]
    h0 = (jnp.concatenate([elem_rows, res_rows, pos_emb], axis=-1)
          + sinusoidal_embedding(n, NODE_DIM))                        # [N, 48]

    # --- geometry glue: 16-NN graph + hoisted edge-MLP attention bias (both layers) ---
    bias = edge_attention_bias(coords, params["we1"], params["be1"], params["we2"])

    pool = make_residue_pool(residue_ids, num_residues)
    wqkv, wo = prepare_attention_weights(params)

    # --- fused Pallas kernel: 2 transformer layers + readout + residue pooling ---
    return fused_forward(
        h0, bias, wqkv, wo,
        params["w1"].astype(jnp.bfloat16), params["b1"],
        params["w2"].astype(jnp.bfloat16), params["b2"],
        params["wout"].astype(jnp.bfloat16), params["bout"], pool)


if __name__ == "__main__":
    key = jax.random.PRNGKey(0)
    k_par, k_el, k_res, k_pos, k_xyz = jax.random.split(key, 5)

    N_ATOMS = 32
    N_RESIDUES = 4
    ATOMS_PER_RES = N_ATOMS // N_RESIDUES

    params = init_params(k_par)

    elements = jax.random.randint(k_el, (N_ATOMS,), 0, 5)               # element ids
    residue_types = jax.random.randint(k_res, (N_ATOMS,), 0, 4)         # residue-type ids
    positions = jax.random.normal(k_pos, (N_ATOMS,), jnp.float32)       # scalar position feature
    coords = jax.random.normal(k_xyz, (N_ATOMS, 3), jnp.float32) * 3.0  # 3D coordinates
    residue_ids = jnp.arange(N_ATOMS, dtype=jnp.int32) // ATOMS_PER_RES

    p_reactivity = geometric_model_rna_forward(
        params, coords, elements, residue_types, positions, residue_ids,
        num_residues=N_RESIDUES)
    p_reactivity = jax.block_until_ready(p_reactivity)

    assert p_reactivity.shape == (N_RESIDUES, OUT_DIM)
    assert bool(jnp.all(jnp.isfinite(p_reactivity)))
    print("KERNEL_OK")
</pallas_src>

<mosaic_0001>
module attributes {stable_mosaic.version = 11 : i64} {
  func.func @fused_kernel(%arg0: memref<32x48xf32, #tpu.memory_space<vmem>>, %arg1: memref<2x32x32xf32, #tpu.memory_space<vmem>>, %arg2: memref<2x48x384xbf16, #tpu.memory_space<vmem>>, %arg3: memref<2x128x48xbf16, #tpu.memory_space<vmem>>, %arg4: memref<2x48x96xbf16, #tpu.memory_space<vmem>>, %arg5: memref<2x1x96xf32, #tpu.memory_space<vmem>>, %arg6: memref<2x96x48xbf16, #tpu.memory_space<vmem>>, %arg7: memref<2x1x48xf32, #tpu.memory_space<vmem>>, %arg8: memref<48x2xbf16, #tpu.memory_space<vmem>>, %arg9: memref<1x2xf32, #tpu.memory_space<vmem>>, %arg10: memref<4x32xf32, #tpu.memory_space<vmem>>, %arg11: memref<4x2xf32, #tpu.memory_space<vmem>>) attributes {dimension_semantics = [], scalar_prefetch = 0 : i64, scratch_operands = 0 : i64, tpu.core_type = #tpu.core_type<tc>} {
    %c0 = arith.constant 0 : index
    %c0_0 = arith.constant 0 : index
    %0 = vector.load %arg0[%c0, %c0_0] : memref<32x48xf32, #tpu.memory_space<vmem>>, vector<32x48xf32>
    %1 = arith.truncf %0 : vector<32x48xf32> to vector<32x48xbf16>
    %c0_1 = arith.constant 0 : index
    %c0_2 = arith.constant 0 : index
    %c0_3 = arith.constant 0 : index
    %2 = vector.load %arg2[%c0_1, %c0_2, %c0_3] : memref<2x48x384xbf16, #tpu.memory_space<vmem>>, vector<1x48x384xbf16>
    %3 = vector.shape_cast %2 : vector<1x48x384xbf16> to vector<48x384xbf16>
    %cst = arith.constant dense<0.000000e+00> : vector<32x384xf32>
    %4 = tpu.matmul %1, %3, %cst {dimension_numbers = #tpu.dot_dimension_numbers<[1], [0], [0], [1], [0, 0, 1, 1], [], []>} : vector<32x48xbf16>, vector<48x384xbf16>, vector<32x384xf32> -> vector<32x384xf32>
    %5 = vector.extract_strided_slice %4 {offsets = [0, 0], sizes = [32, 128], strides = [1, 1]} : vector<32x384xf32> to vector<32x128xf32>
    %6 = vector.extract_strided_slice %4 {offsets = [0, 128], sizes = [32, 128], strides = [1, 1]} : vector<32x384xf32> to vector<32x128xf32>
    %7 = vector.extract_strided_slice %4 {offsets = [0, 256], sizes = [32, 128], strides = [1, 1]} : vector<32x384xf32> to vector<32x128xf32>
    %8 = arith.truncf %5 : vector<32x128xf32> to vector<32x128xbf16>
    %9 = arith.truncf %6 : vector<32x128xf32> to vector<32x128xbf16>
    %cst_4 = arith.constant dense<0.000000e+00> : vector<32x32xf32>
    %10 = tpu.matmul %8, %9, %cst_4 {dimension_numbers = #tpu.dot_dimension_numbers<[1], [1], [0], [0], [0, 0, 1, 0], [], []>} : vector<32x128xbf16>, vector<32x128xbf16>, vector<32x32xf32> -> vector<32x32xf32>
    %c0_5 = arith.constant 0 : index
    %c0_6 = arith.constant 0 : index
    %c0_7 = arith.constant 0 : index
    %11 = vector.load %arg1[%c0_5, %c0_6, %c0_7] : memref<2x32x32xf32, #tpu.memory_space<vmem>>, vector<1x32x32xf32>
    %12 = vector.shape_cast %11 : vector<1x32x32xf32> to vector<32x32xf32>
    %13 = arith.addf %10, %12 : vector<32x32xf32>
    %cst_8 = arith.constant dense<0xFF800000> : vector<32xf32>
    %14 = vector.multi_reduction <maximumf>, %13, %cst_8 [1] : vector<32x32xf32> to vector<32xf32>
    %15 = vector.shape_cast %14 : vector<32xf32> to vector<32x1xf32>
    %16 = vector.broadcast %15 : vector<32x1xf32> to vector<32x32xf32>
    %17 = arith.subf %13, %16 : vector<32x32xf32>
    %18 = math.exp %17 : vector<32x32xf32>
    %cst_9 = arith.constant dense<0.000000e+00> : vector<32xf32>
    %19 = vector.multi_reduction <add>, %18, %cst_9 [1] : vector<32x32xf32> to vector<32xf32>
    %20 = vector.shape_cast %19 : vector<32xf32> to vector<32x1xf32>
    %21 = arith.truncf %18 : vector<32x32xf32> to vector<32x32xbf16>
    %22 = arith.truncf %7 : vector<32x128xf32> to vector<32x128xbf16>
    %cst_10 = arith.constant dense<0.000000e+00> : vector<32x128xf32>
    %23 = tpu.matmul %21, %22, %cst_10 {dimension_numbers = #tpu.dot_dimension_numbers<[1], [0], [0], [1], [0, 0, 1, 1], [], []>} : vector<32x32xbf16>, vector<32x128xbf16>, vector<32x128xf32> -> vector<32x128xf32>
    %24 = arith.truncf %23 : vector<32x128xf32> to vector<32x128xbf16>
    %c0_11 = arith.constant 0 : index
    %c0_12 = arith.constant 0 : index
    %c0_13 = arith.constant 0 : index
    %25 = vector.load %arg3[%c0_11, %c0_12, %c0_13] : memref<2x128x48xbf16, #tpu.memory_space<vmem>>, vector<1x128x48xbf16>
    %26 = vector.shape_cast %25 : vector<1x128x48xbf16> to vector<128x48xbf16>
    %cst_14 = arith.constant dense<0.000000e+00> : vector<32x48xf32>
    %27 = tpu.matmul %24, %26, %cst_14 {dimension_numbers = #tpu.dot_dimension_numbers<[1], [0], [0], [1], [0, 0, 1, 1], [], []>} : vector<32x128xbf16>, vector<128x48xbf16>, vector<32x48xf32> -> vector<32x48xf32>
    %28 = tpu.reciprocal %20 {approx = true} : vector<32x1xf32> -> vector<32x1xf32>
    %29 = vector.broadcast %28 : vector<32x1xf32> to vector<32x48xf32>
    %30 = arith.mulf %27, %29 : vector<32x48xf32>
    %31 = arith.addf %0, %30 : vector<32x48xf32>
    %32 = arith.truncf %31 : vector<32x48xf32> to vector<32x48xbf16>
    %c0_15 = arith.constant 0 : index
    %c0_16 = arith.constant 0 : index
    %c0_17 = arith.constant 0 : index
    %33 = vector.load %arg4[%c0_15, %c0_16, %c0_17] : memref<2x48x96xbf16, #tpu.memory_space<vmem>>, vector<1x48x96xbf16>
    %34 = vector.shape_cast %33 : vector<1x48x96xbf16> to vector<48x96xbf16>
    %cst_18 = arith.constant dense<0.000000e+00> : vector<32x96xf32>
    %35 = tpu.matmul %32, %34, %cst_18 {dimension_numbers = #tpu.dot_dimension_numbers<[1], [0], [0], [1], [0, 0, 1, 1], [], []>} : vector<32x48xbf16>, vector<48x96xbf16>, vector<32x96xf32> -> vector<32x96xf32>
    %c0_19 = arith.constant 0 : index
    %c0_20 = arith.constant 0 : index
    %c0_21 = arith.constant 0 : index
    %36 = vector.load %arg5[%c0_19, %c0_20, %c0_21] : memref<2x1x96xf32, #tpu.memory_space<vmem>>, vector<1x1x96xf32>
    %37 = vector.shape_cast %36 : vector<1x1x96xf32> to vector<1x96xf32>
    %38 = vector.broadcast %37 : vector<1x96xf32> to vector<32x96xf32>
    %39 = arith.addf %35, %38 : vector<32x96xf32>
    %cst_22 = arith.constant 0.000000e+00 : f32
    %40 = vector.broadcast %cst_22 : f32 to vector<32x96xf32>
    %41 = arith.maximumf %39, %40 : vector<32x96xf32>
    %42 = arith.truncf %41 : vector<32x96xf32> to vector<32x96xbf16>
    %c0_23 = arith.constant 0 : index
    %c0_24 = arith.constant 0 : index
    %c0_25 = arith.constant 0 : index
    %43 = vector.load %arg6[%c0_23, %c0_24, %c0_25] : memref<2x96x48xbf16, #tpu.memory_space<vmem>>, vector<1x96x48xbf16>
    %44 = vector.shape_cast %43 : vector<1x96x48xbf16> to vector<96x48xbf16>
    %cst_26 = arith.constant dense<0.000000e+00> : vector<32x48xf32>
    %45 = tpu.matmul %42, %44, %cst_26 {dimension_numbers = #tpu.dot_dimension_numbers<[1], [0], [0], [1], [0, 0, 1, 1], [], []>} : vector<32x96xbf16>, vector<96x48xbf16>, vector<32x48xf32> -> vector<32x48xf32>
    %c0_27 = arith.constant 0 : index
    %c0_28 = arith.constant 0 : index
    %c0_29 = arith.constant 0 : index
    %46 = vector.load %arg7[%c0_27, %c0_28, %c0_29] : memref<2x1x48xf32, #tpu.memory_space<vmem>>, vector<1x1x48xf32>
    %47 = vector.shape_cast %46 : vector<1x1x48xf32> to vector<1x48xf32>
    %48 = vector.broadcast %47 : vector<1x48xf32> to vector<32x48xf32>
    %49 = arith.addf %45, %48 : vector<32x48xf32>
    %50 = arith.addf %31, %49 : vector<32x48xf32>
    %51 = arith.truncf %50 : vector<32x48xf32> to vector<32x48xbf16>
    %c1 = arith.constant 1 : index
    %c0_30 = arith.constant 0 : index
    %c0_31 = arith.constant 0 : index
    %52 = vector.load %arg2[%c1, %c0_30, %c0_31] : memref<2x48x384xbf16, #tpu.memory_space<vmem>>, vector<1x48x384xbf16>
    %53 = vector.shape_cast %52 : vector<1x48x384xbf16> to vector<48x384xbf16>
    %cst_32 = arith.constant dense<0.000000e+00> : vector<32x384xf32>
    %54 = tpu.matmul %51, %53, %cst_32 {dimension_numbers = #tpu.dot_dimension_numbers<[1], [0], [0], [1], [0, 0, 1, 1], [], []>} : vector<32x48xbf16>, vector<48x384xbf16>, vector<32x384xf32> -> vector<32x384xf32>
    %55 = vector.extract_strided_slice %54 {offsets = [0, 0], sizes = [32, 128], strides = [1, 1]} : vector<32x384xf32> to vector<32x128xf32>
    %56 = vector.extract_strided_slice %54 {offsets = [0, 128], sizes = [32, 128], strides = [1, 1]} : vector<32x384xf32> to vector<32x128xf32>
    %57 = vector.extract_strided_slice %54 {offsets = [0, 256], sizes = [32, 128], strides = [1, 1]} : vector<32x384xf32> to vector<32x128xf32>
    %58 = arith.truncf %55 : vector<32x128xf32> to vector<32x128xbf16>
    %59 = arith.truncf %56 : vector<32x128xf32> to vector<32x128xbf16>
    %cst_33 = arith.constant dense<0.000000e+00> : vector<32x32xf32>
    %60 = tpu.matmul %58, %59, %cst_33 {dimension_numbers = #tpu.dot_dimension_numbers<[1], [1], [0], [0], [0, 0, 1, 0], [], []>} : vector<32x128xbf16>, vector<32x128xbf16>, vector<32x32xf32> -> vector<32x32xf32>
    %c1_34 = arith.constant 1 : index
    %c0_35 = arith.constant 0 : index
    %c0_36 = arith.constant 0 : index
    %61 = vector.load %arg1[%c1_34, %c0_35, %c0_36] : memref<2x32x32xf32, #tpu.memory_space<vmem>>, vector<1x32x32xf32>
    %62 = vector.shape_cast %61 : vector<1x32x32xf32> to vector<32x32xf32>
    %63 = arith.addf %60, %62 : vector<32x32xf32>
    %cst_37 = arith.constant dense<0xFF800000> : vector<32xf32>
    %64 = vector.multi_reduction <maximumf>, %63, %cst_37 [1] : vector<32x32xf32> to vector<32xf32>
    %65 = vector.shape_cast %64 : vector<32xf32> to vector<32x1xf32>
    %66 = vector.broadcast %65 : vector<32x1xf32> to vector<32x32xf32>
    %67 = arith.subf %63, %66 : vector<32x32xf32>
    %68 = math.exp %67 : vector<32x32xf32>
    %cst_38 = arith.constant dense<0.000000e+00> : vector<32xf32>
    %69 = vector.multi_reduction <add>, %68, %cst_38 [1] : vector<32x32xf32> to vector<32xf32>
    %70 = vector.shape_cast %69 : vector<32xf32> to vector<32x1xf32>
    %71 = arith.truncf %68 : vector<32x32xf32> to vector<32x32xbf16>
    %72 = arith.truncf %57 : vector<32x128xf32> to vector<32x128xbf16>
    %cst_39 = arith.constant dense<0.000000e+00> : vector<32x128xf32>
    %73 = tpu.matmul %71, %72, %cst_39 {dimension_numbers = #tpu.dot_dimension_numbers<[1], [0], [0], [1], [0, 0, 1, 1], [], []>} : vector<32x32xbf16>, vector<32x128xbf16>, vector<32x128xf32> -> vector<32x128xf32>
    %74 = arith.truncf %73 : vector<32x128xf32> to vector<32x128xbf16>
    %c1_40 = arith.constant 1 : index
    %c0_41 = arith.constant 0 : index
    %c0_42 = arith.constant 0 : index
    %75 = vector.load %arg3[%c1_40, %c0_41, %c0_42] : memref<2x128x48xbf16, #tpu.memory_space<vmem>>, vector<1x128x48xbf16>
    %76 = vector.shape_cast %75 : vector<1x128x48xbf16> to vector<128x48xbf16>
    %cst_43 = arith.constant dense<0.000000e+00> : vector<32x48xf32>
    %77 = tpu.matmul %74, %76, %cst_43 {dimension_numbers = #tpu.dot_dimension_numbers<[1], [0], [0], [1], [0, 0, 1, 1], [], []>} : vector<32x128xbf16>, vector<128x48xbf16>, vector<32x48xf32> -> vector<32x48xf32>
    %78 = tpu.reciprocal %70 {approx = true} : vector<32x1xf32> -> vector<32x1xf32>
    %79 = vector.broadcast %78 : vector<32x1xf32> to vector<32x48xf32>
    %80 = arith.mulf %77, %79 : vector<32x48xf32>
    %81 = arith.addf %50, %80 : vector<32x48xf32>
    %82 = arith.truncf %81 : vector<32x48xf32> to vector<32x48xbf16>
    %c1_44 = arith.constant 1 : index
    %c0_45 = arith.constant 0 : index
    %c0_46 = arith.constant 0 : index
    %83 = vector.load %arg4[%c1_44, %c0_45, %c0_46] : memref<2x48x96xbf16, #tpu.memory_space<vmem>>, vector<1x48x96xbf16>
    %84 = vector.shape_cast %83 : vector<1x48x96xbf16> to vector<48x96xbf16>
    %cst_47 = arith.constant dense<0.000000e+00> : vector<32x96xf32>
    %85 = tpu.matmul %82, %84, %cst_47 {dimension_numbers = #tpu.dot_dimension_numbers<[1], [0], [0], [1], [0, 0, 1, 1], [], []>} : vector<32x48xbf16>, vector<48x96xbf16>, vector<32x96xf32> -> vector<32x96xf32>
    %c1_48 = arith.constant 1 : index
    %c0_49 = arith.constant 0 : index
    %c0_50 = arith.constant 0 : index
    %86 = vector.load %arg5[%c1_48, %c0_49, %c0_50] : memref<2x1x96xf32, #tpu.memory_space<vmem>>, vector<1x1x96xf32>
    %87 = vector.shape_cast %86 : vector<1x1x96xf32> to vector<1x96xf32>
    %88 = vector.broadcast %87 : vector<1x96xf32> to vector<32x96xf32>
    %89 = arith.addf %85, %88 : vector<32x96xf32>
    %cst_51 = arith.constant 0.000000e+00 : f32
    %90 = vector.broadcast %cst_51 : f32 to vector<32x96xf32>
    %91 = arith.maximumf %89, %90 : vector<32x96xf32>
    %92 = arith.truncf %91 : vector<32x96xf32> to vector<32x96xbf16>
    %c1_52 = arith.constant 1 : index
    %c0_53 = arith.constant 0 : index
    %c0_54 = arith.constant 0 : index
    %93 = vector.load %arg6[%c1_52, %c0_53, %c0_54] : memref<2x96x48xbf16, #tpu.memory_space<vmem>>, vector<1x96x48xbf16>
    %94 = vector.shape_cast %93 : vector<1x96x48xbf16> to vector<96x48xbf16>
    %cst_55 = arith.constant dense<0.000000e+00> : vector<32x48xf32>
    %95 = tpu.matmul %92, %94, %cst_55 {dimension_numbers = #tpu.dot_dimension_numbers<[1], [0], [0], [1], [0, 0, 1, 1], [], []>} : vector<32x96xbf16>, vector<96x48xbf16>, vector<32x48xf32> -> vector<32x48xf32>
    %c1_56 = arith.constant 1 : index
    %c0_57 = arith.constant 0 : index
    %c0_58 = arith.constant 0 : index
    %96 = vector.load %arg7[%c1_56, %c0_57, %c0_58] : memref<2x1x48xf32, #tpu.memory_space<vmem>>, vector<1x1x48xf32>
    %97 = vector.shape_cast %96 : vector<1x1x48xf32> to vector<1x48xf32>
    %98 = vector.broadcast %97 : vector<1x48xf32> to vector<32x48xf32>
    %99 = arith.addf %95, %98 : vector<32x48xf32>
    %100 = arith.addf %81, %99 : vector<32x48xf32>
    %c0_59 = arith.constant 0 : index
    %c0_60 = arith.constant 0 : index
    %101 = vector.load %arg10[%c0_59, %c0_60] : memref<4x32xf32, #tpu.memory_space<vmem>>, vector<4x32xf32>
    %102 = arith.truncf %101 : vector<4x32xf32> to vector<4x32xbf16>
    %103 = arith.truncf %100 : vector<32x48xf32> to vector<32x48xbf16>
    %cst_61 = arith.constant dense<0.000000e+00> : vector<4x48xf32>
    %104 = tpu.matmul %102, %103, %cst_61 {dimension_numbers = #tpu.dot_dimension_numbers<[1], [0], [0], [1], [0, 0, 1, 1], [], []>} : vector<4x32xbf16>, vector<32x48xbf16>, vector<4x48xf32> -> vector<4x48xf32>
    %105 = arith.truncf %104 : vector<4x48xf32> to vector<4x48xbf16>
    %c0_62 = arith.constant 0 : index
    %c0_63 = arith.constant 0 : index
    %106 = vector.load %arg8[%c0_62, %c0_63] : memref<48x2xbf16, #tpu.memory_space<vmem>>, vector<48x2xbf16>
    %cst_64 = arith.constant dense<0.000000e+00> : vector<4x2xf32>
    %107 = tpu.matmul %105, %106, %cst_64 {dimension_numbers = #tpu.dot_dimension_numbers<[1], [0], [0], [1], [0, 0, 1, 1], [], []>} : vector<4x48xbf16>, vector<48x2xbf16>, vector<4x2xf32> -> vector<4x2xf32>
    %c0_65 = arith.constant 0 : index
    %c0_66 = arith.constant 0 : index
    %108 = vector.load %arg9[%c0_65, %c0_66] : memref<1x2xf32, #tpu.memory_space<vmem>>, vector<1x2xf32>
    %109 = vector.broadcast %108 : vector<1x2xf32> to vector<4x2xf32>
    %110 = arith.addf %107, %109 : vector<4x2xf32>
    %c0_67 = arith.constant 0 : index
    %c0_68 = arith.constant 0 : index
    %111 = vector.load %arg11[%c0_67, %c0_68] : memref<4x2xf32, #tpu.memory_space<vmem>>, vector<4x2xf32>
    tpu.vector_store %arg11[%c0_67, %c0_68], %110 {strides = array<i32>} : memref<4x2xf32, #tpu.memory_space<vmem>>, vector<4x2xf32>,
    return
  }
}

</mosaic_0001>

<bundles_post_ra>
// kernel: geometric_model_rna_forward.1
= control target key start
LH: loop header
LB: loop body
LE: loop exit
PB: predicated region body
PF: predicated region fallthrough
CT: control target
= control target key end

     0   :  { %v1966_v1 = vmov 0   ;;  %vm105_vm0 = vcmask 392192   ;;  %vm271_vm1 = vcmask 261120   ;;  %vm643_vm2 = vcmask 785408   ;;  %s2353_s2 = inlined_call_operand.vmem [shape: bf16[2,48,384], index: 2, kind: input, shape index: {}]   ;;  %s2354_s0 = inlined_call_operand.vmem [shape: f32[32,48], index: 0, kind: input, shape index: {}]   ;;  %s2355_s1 = inlined_call_operand.vmem [shape: f32[2,32,32], index: 1, kind: input, shape index: {}]   ;;  %s2356_s3 = inlined_call_operand.vmem [shape: bf16[2,128,48], index: 3, kind: input, shape index: {}]   ;;  %s2357_s4 = inlined_call_operand.vmem [shape: bf16[2,48,96], index: 4, kind: input, shape index: {}]   ;;  %s2358_s6 = inlined_call_operand.vmem [shape: bf16[2,96,48], index: 6, kind: input, shape index: {}]   ;;  %s2359_s5 = inlined_call_operand.vmem [shape: f32[2,1,96], index: 5, kind: input, shape index: {}]   ;;  %s2360_s7 = inlined_call_operand.vmem [shape: f32[2,1,48], index: 7, kind: input, shape index: {}]   ;;  %s2361_s8 = inlined_call_operand.vmem [shape: bf16[48,2], index: 8, kind: input, shape index: {}]   ;;  %s2362_s10 = inlined_call_operand.vmem [shape: f32[4,32], index: 10, kind: input, shape index: {}]   ;;  %s2363_s9 = inlined_call_operand.vmem [shape: f32[1,2], index: 9, kind: input, shape index: {}]   ;;  %s2364_s11 = inlined_call_operand.vmem [shape: f32[4,2], index: 11, kind: output, shape index: {}]  }
   0x1   :  { %v1873_v0 = vld [vmem:[%s2353_s2 + $0x4] ss:$12 sps:$4 sm:$0xff]   ;;  %144 = vmatprep.mubr.bf16.mxu0 %v1966_v1  ;;  %v1875_v2 = vld [vmem:[%s2353_s2] ss:$12 sps:$4 sm:$0xff]   ;;  %v1876_v3 = vld [vmem:[%s2353_s2 + $0x1c] ss:$12 sps:$4 sm:$0xff]  }
   0x2   :  { %112 = vmatprep.subr.bf16.mxu0 %v1873_v0  ;;  %v1878_v4 = vld [vmem:[%s2353_s2 + $0x18] ss:$12 sps:$4 sm:$0xff]   ;;  %v1879_v5 = vld [vmem:[%s2353_s2 + $0x34] ss:$12 sps:$4 sm:$0xff]   ;;  %v2053_v7 = vld [vmem:[%s2354_s0 + $0x8] sm:$0xff]  ;;  %vm1968_vm3 = vmmov 0  }
   0x3   :  { %113 = vmatpush1.bf16.msra.mxu0 %v1875_v2  ;;  %v2048_v6 = vld [vmem:[%s2354_s0] sm:$0xff]  ;;  %v1881_v8 = vld [vmem:[%s2353_s2 + $0x30] ss:$12 sps:$4 sm:$0xff]   ;;  %v1882_v13 = vld [vmem:[%s2353_s2 + $0x8] ss:$12 sps:$4 sm:$0xff]   ;;  %vm1489_vm4 = vcmask 11264  }
   0x4   :  { %114 = vmatprep.subr.bf16.mxu0 %v1876_v3  ;;  %v43_v9 = vpack.c.bf16 %v2053_v7, %v2048_v6  ;;  %v2066_v10 = vld [vmem:[%s2354_s0 + $0x10] sm:$0xff]  ;;  %v2071_v11 = vld [vmem:[%s2354_s0 + $0x18] sm:$0xff]  ;;  %v1883_v14 = vld [vmem:[%s2353_s2 + $0x20] ss:$12 sps:$4 sm:$0xff]   ;;  %1708 = vmatprep.subr.bf16.mxu1 %v1882_v13 }
   0x5   :  { %v44_v12 = vpack.c.bf16 %v2071_v11, %v2066_v10  ;;  %1709 = vmatpush3.bf16.msra.mxu1 %v1882_v13  ;;  %v1884_v15 = vld [vmem:[%s2353_s2 + $0x38] ss:$12 sps:$4 sm:$0xff]   ;;  %v220_v28 = vld [vmem:[%s2355_s1 + $0x10] sm:$0xff]  ;;  %v219_v34 = vld [vmem:[%s2355_s1 + $0x8] sm:$0xff] }
   0x6   :  { %1714 = vmatprep.mubr.msk.bf16.mxu1 %vm105_vm0, %v43_v9  ;;  %1710 = vmatprep.subr.bf16.mxu1 %v1883_v14  ;;  %v218_v29 = vld [vmem:[%s2355_s1] sm:$0xff]  ;;  %v221_v31 = vld [vmem:[%s2355_s1 + $0x18] sm:$0xff] }
   0x7   :  { %115 = vmatpush1.bf16.msra.mxu0 %v1878_v4  ;;  %v1885_v13 = vld [vmem:[%s2356_s3] sm:$0xff]  }
   0x8   :  { %116 = vmatprep.subr.bf16.mxu0 %v1879_v5 }
   0x9   :  { %1711 = vmatpush3.bf16.msra.mxu1 %v1883_v14  ;;  %v1886_v14 = vld [vmem:[%s2356_s3 + $0x8] sm:$0xff]  }
   0xa   :  { %1712 = vmatprep.subr.bf16.mxu1 %v1884_v15 }
   0xb   :  { %117 = vmatpush1.bf16.msra.mxu0 %v1881_v8 }
   0xd   :  { %1713 = vmatpush3.bf16.msra.mxu1 %v1884_v15  ;;  %v1887_v15 = vld [vmem:[%s2356_s3 + $0x10] sm:$0xff]  }
   0xe   :  { %1504 = vmatmul.mubr.msk.bf16.vlgmr.msra.gmra.mrb[0].mxu0 %vm105_vm0, %v43_v9 }
   0xf   :  { %154 = vmatprep.mubr.bf16.mxu0 %v1966_v1 }
  0x10   :  { %1715 = vmatmul.mubr.msk.bf16.vlgmr.msra.gmra.mrb[0].mxu1 %vm105_vm0, %v44_v12 }
  0x16   :  { %1505 = vmatmul.mubr.msk.bf16.gmra.mrb[4].mxu0 %vm105_vm0, %v44_v12 }
  0xe1   :  { %v146_v16 = vpop.f32.mrb[0].mxu0 }
  0xe2   :  { %v148_v17 = vpop.f32.mrb[1].mxu0 }
  0xe3   :  { %v150_v18 = vpop.f32.mrb[2].mxu0  ;;  %v1716_v44 = vpop.f32.mrb[0].mxu1 }
  0xe4   :  { %v214_v19 = vpack.c.bf16 %v150_v18, %v146_v16  ;;  %v152_v20 = vpop.f32.mrb[3].mxu0  ;;  %v199_v45 = vpop.f32.mrb[1].mxu1  ;;  %v1888_v16 = vld [vmem:[%s2356_s3 + $0x18] sm:$0xff]   ;;  %v1890_v18 = vld [vmem:[%s2356_s3 + $0x28] sm:$0xff]  }
  0xe5   :  { %v216_v21 = vpack.c.bf16 %v152_v20, %v148_v17  ;;  %v1717_v46 = vpop.f32.mrb[2].mxu1  ;;  %v1889_v17 = vld [vmem:[%s2356_s3 + $0x20] sm:$0xff]   ;;  %v1892_v20 = vld [vmem:[%s2356_s3 + $0x38] sm:$0xff]  }
  0xe6   :  { %1722 = vmatprep.mubr.bf16.mxu0 %v214_v19  ;;  %v202_v47 = vpop.f32.mrb[3].mxu1  ;;  %v311_v48 = vpack.c.bf16 %v1717_v46, %v1716_v44  ;;  %v1891_v19 = vld [vmem:[%s2356_s3 + $0x30] sm:$0xff]  }
  0xe7   :  { %1718 = vmatprep.subr.bf16.mxu0 %v216_v21  ;;  %v310_v49 = vpack.c.bf16 %v202_v47, %v199_v45 }
  0xe8   :  { %1719 = vmatpush3.bf16.xpose.msra.mxu0 %v216_v21  ;;  %v1893_v21 = vld [vmem:[%s2357_s4] sm:$0xff]  }
  0xe9   :  { %v156_v22 = vpop.f32.mrb[4].mxu0  ;;  %1726 = vmatprep.subr.bf16.mxu1 %v310_v49 }
  0xea   :  { %v158_v23 = vpop.f32.mrb[5].mxu0  ;;  %1727 = vmatpush3.bf16.msra.mxu1 %v310_v49 }
  0xeb   :  { %v160_v24 = vpop.f32.mrb[6].mxu0  ;;  %1728 = vmatprep.subr.bf16.mxu1 %v311_v48 }
  0xec   :  { %v215_v25 = vpack.c.bf16 %v160_v24, %v156_v22  ;;  %v162_v26 = vpop.f32.mrb[7].mxu0 }
  0xed   :  { %v217_v27 = vpack.c.bf16 %v162_v26, %v158_v23 }
  0xee   :  { %1729 = vmatpush3.bf16.msra.mxu1 %v311_v48 }
  0xef   :  { %1720 = vmatprep.subr.bf16.mxu0 %v217_v27  ;;  %1734 = vmatprep.subr.bf16.mxu1 %v1885_v13 }
  0xf0   :  { %1721 = vmatpush3.bf16.xpose.msra.mxu0 %v217_v27 }
  0xf1   :  { %1754 = vmatprep.subr.bf16.mxu0 %v1893_v21 }
  0xf7   :  { %1723 = vmatmul.mubr.bf16.vlgmr.msra.gmra.mrb[8].mxu0 %v215_v25 }
  0xf8   :  { %1755 = vmatpush3.bf16.msra.mxu0 %v1893_v21 }
 0x1ca   :  { %v1724_v30 = vpop.f32.mrb[8].mxu0 }
 0x1cb   :  { %v265_v32 = vadd.f32 %v1724_v30, %v220_v28  ;;  %v256_v33 = vpop.f32.mrb[9].mxu0  ;;  %v1894_v28 = vld [vmem:[%s2357_s4 + $0x8] sm:$0xff]   ;;  %v1896_v30 = vld [vmem:[%s2358_s6] sm:$0xff]  }
 0x1cc   :  { %v257_v35 = vadd.f32 %v256_v33, %v218_v29  ;;  %v1725_v36 = vpop.f32.mrb[10].mxu0  ;;  %1756 = vmatprep.subr.bf16.mxu0 %v1894_v28  ;;  %v1895_v29 = vld [vmem:[%s2357_s4 + $0x10] sm:$0xff]  }
 0x1cd   :  { %v268_v37 = vadd.f32 %v1725_v36, %v221_v31  ;;  %v259_v38 = vpop.f32.mrb[11].mxu0  ;;  %v278_v39 = vsel %vm271_vm1, %v265_v32, -inf  ;;  %1757 = vmatpush3.bf16.msra.mxu0 %v1894_v28 }
 0x1ce   :  { %v260_v40 = vadd.f32 %v259_v38, %v219_v34  ;;  %279 = vmax.xlane.f32.xlu1 %v278_v39  ;;  %v272_v41 = vsel %vm271_vm1, %v257_v35, -inf  ;;  %1758 = vmatprep.subr.bf16.mxu0 %v1895_v29 }
 0x1cf   :  { %273 = vmax.xlane.f32.xlu0 %v272_v41  ;;  %v281_v42 = vsel %vm271_vm1, %v268_v37, -inf }
 0x1d0   :  { %v275_v43 = vsel %vm271_vm1, %v260_v40, -inf }
 0x1d1   :  { %1759 = vmatpush3.bf16.msra.mxu0 %v1895_v29 }
 0x1d2   :  { %282 = vmax.xlane.f32.xlu1 %v281_v42  ;;  %1764 = vmatprep.subr.bf16.mxu0 %v1896_v30 }
 0x1d3   :  { %276 = vmax.xlane.f32.xlu0 %v275_v43 }
 0x25b   :  { %v280_v50 = vpop.xlane.xlu1 %279 }
 0x25c   :  { %v286_v51 = vsub.f32 %v265_v32, %v280_v50  ;;  %v274_v52 = vpop.xlane.xlu0 %273 }
 0x25d   :  { %v284_v53 = vsub.f32 %v257_v35, %v274_v52 }
 0x25e   :  { %v292_v54 = vmul.f32 1.442695, %v286_v51 }
 0x25f   :  { %v288_v55 = vmul.f32 1.442695, %v284_v53  ;;  %v283_v56 = vpop.xlane.xlu1 %282  ;;  %v1901_v53 = vld [vmem:[%s2358_s6 + $0x28] sm:$0xff]  }
 0x260   :  { %v287_v57 = vsub.f32 %v268_v37, %v283_v56  ;;  %v277_v58 = vpop.xlane.xlu0 %276  ;;  %v1905_v56 = vld [vmem:[%s2353_s2 + $0x50] ss:$12 sps:$4 sm:$0xff]  }
 0x261   :  { %1934 = vpow2.f32 %v288_v55  ;;  %v285_v59 = vsub.f32 %v260_v40, %v277_v58  ;;  %v1904_v55 = vld [vmem:[%s2353_s2 + $0x4c] ss:$12 sps:$4 sm:$0xff]  }
 0x262   :  { %v294_v60 = vmul.f32 1.442695, %v287_v57  ;;  %1936 = vpow2.f32 %v292_v54  ;;  %v1902_v54 = vld [vmem:[%s2353_s2 + $0x48] ss:$12 sps:$4 sm:$0xff]   ;;  %v1518_v57 = vld [vmem:[%s2359_s5] ss:$0 sm:$0xff] }
 0x263   :  { %v290_v61 = vmul.f32 1.442695, %v285_v59 }
 0x264   :  { %1938 = vpow2.f32 %v294_v60 }
 0x265   :  { %1940 = vpow2.f32 %v290_v61 }
 0x26b   :  { %v1935_v62 = vpop.eup %1934 }
 0x26c   :  { %v296_v63 = vsel %vm271_vm1, %v1935_v62, 0.0  ;;  %v1937_v0 = vpop.eup %1936 }
 0x26d   :  { %297 = vadd.xlane.f32.xlu0 %v296_v63  ;;  %v302_v4 = vsel %vm271_vm1, %v1937_v0, 0.0 }
 0x26e   :  { %v1939_v2 = vpop.eup %1938 }
 0x26f   :  { %v1941_v3 = vpop.eup %1940  ;;  %v309_v9 = vpack.c.bf16 %v1939_v2, %v1937_v0  ;;  %v305_v12 = vsel %vm271_vm1, %v1939_v2, 0.0 }
 0x270   :  { %v299_v5 = vsel %vm271_vm1, %v1941_v3, 0.0  ;;  %v308_v8 = vpack.c.bf16 %v1941_v3, %v1935_v62 }
 0x271   :  { %303 = vadd.xlane.f32.xlu0 %v302_v4  ;;  %300 = vadd.xlane.f32.xlu1 %v299_v5 }
 0x272   :  { %1730 = vmatprep.mubr.msk.bf16.mxu1 %vm271_vm1, %v308_v8 }
 0x273   :  { %1731 = vmatmul.mubr.msk.bf16.vlgmr.msra.gmra.mrb[4].mxu1 %vm271_vm1, %v309_v9 }
 0x274   :  { %1735 = vmatpush3.bf16.msra.mxu1 %v1885_v13  ;;  %v1908_v13 = vld [vmem:[%s2353_s2 + $0x64] ss:$12 sps:$4 sm:$0xff]  }
 0x275   :  { %306 = vadd.xlane.f32.xlu1 %v305_v12  ;;  %1736 = vmatprep.subr.bf16.mxu1 %v1886_v14 }
 0x278   :  { %1737 = vmatpush3.bf16.msra.mxu1 %v1886_v14  ;;  %v1906_v14 = vld [vmem:[%s2353_s2 + $0x60] ss:$12 sps:$4 sm:$0xff]  }
 0x279   :  { %1738 = vmatprep.subr.bf16.mxu1 %v1887_v15 }
 0x27c   :  { %1739 = vmatpush3.bf16.msra.mxu1 %v1887_v15  ;;  %v1909_v15 = vld [vmem:[%s2353_s2 + $0x68] ss:$12 sps:$4 sm:$0xff]  }
 0x27d   :  { %1740 = vmatprep.subr.bf16.mxu1 %v1888_v16 }
 0x280   :  { %1741 = vmatpush3.bf16.msra.mxu1 %v1888_v16  ;;  %v1912_v16 = vld [vmem:[%s2353_s2 + $0x7c] ss:$12 sps:$4 sm:$0xff]  }
 0x281   :  { %1742 = vmatprep.subr.bf16.mxu1 %v1889_v17 }
 0x284   :  { %1743 = vmatpush3.bf16.msra.mxu1 %v1889_v17  ;;  %v1910_v17 = vld [vmem:[%s2353_s2 + $0x78] ss:$12 sps:$4 sm:$0xff]  }
 0x285   :  { %1744 = vmatprep.subr.bf16.mxu1 %v1890_v18 }
 0x288   :  { %1745 = vmatpush3.bf16.msra.mxu1 %v1890_v18  ;;  %v1913_v18 = vld [vmem:[%s2353_s2 + $0x80] ss:$12 sps:$4 sm:$0xff]  }
 0x289   :  { %1746 = vmatprep.subr.bf16.mxu1 %v1891_v19 }
 0x28c   :  { %1747 = vmatpush3.bf16.msra.mxu1 %v1891_v19  ;;  %v1524_v19 = vld [vmem:[%s2360_s7] ss:$0 sm:$0xff] }
 0x28d   :  { %1748 = vmatprep.subr.bf16.mxu1 %v1892_v20 }
 0x290   :  { %1749 = vmatpush3.bf16.msra.mxu1 %v1892_v20 }
 0x291   :  { %772 = vmatprep.subr.bf16.mxu1 %v1904_v55 }
 0x2fa   :  { %v298_v31 = vpop.xlane.xlu0 %297 }
 0x2fb   :  { %1942 = vrcp.f32 %v298_v31 }
 0x2fe   :  { %v301_v32 = vpop.xlane.xlu1 %300  ;;  %v304_v33 = vpop.xlane.xlu0 %303 }
 0x2ff   :  { %1944 = vrcp.f32 %v304_v33 }
 0x302   :  { %v307_v34 = vpop.xlane.xlu1 %306 }
 0x303   :  { %1946 = vrcp.f32 %v307_v34 }
 0x304   :  { %1948 = vrcp.f32 %v301_v32 }
 0x305   :  { %v1943_v35 = vpop.eup %1942 }
 0x309   :  { %v1945_v37 = vpop.eup %1944 }
 0x30d   :  { %v1947_v39 = vpop.eup %1946 }
 0x30e   :  { %v1949_v42 = vpop.eup %1948 }
 0x346   :  { %v1732_v22 = vpop.f32.mrb[4].mxu1 }
 0x347   :  { %v352_v23 = vpop.f32.mrb[5].mxu1 }
 0x348   :  { %v1733_v24 = vpop.f32.mrb[6].mxu1 }
 0x349   :  { %v368_v25 = vpack.c.bf16 %v1733_v24, %v1732_v22  ;;  %v355_v26 = vpop.f32.mrb[7].mxu1 }
 0x34a   :  { %v367_v27 = vpack.c.bf16 %v355_v26, %v352_v23 }
 0x34c   :  { %1750 = vmatprep.mubr.bf16.mxu1 %v367_v27 }
 0x34d   :  { %1751 = vmatmul.mubr.bf16.vlgmr.msra.gmra.mrb[8].mxu1 %v368_v25 }
 0x34e   :  { %804 = vmatprep.mubr.bf16.mxu1 %v1966_v1  ;;  %773 = vmatpush1.bf16.msra.mxu1 %v1902_v54  ;;  %v1561_v54 = vld [vmem:[%s2355_s1 + $0x38] sm:$0xff] }
 0x34f   :  { %774 = vmatprep.subr.bf16.mxu1 %v1908_v13 }
 0x352   :  { %775 = vmatpush1.bf16.msra.mxu1 %v1906_v14 }
 0x353   :  { %776 = vmatprep.subr.bf16.mxu1 %v1912_v16 }
 0x356   :  { %777 = vmatpush1.bf16.msra.mxu1 %v1910_v17 }
 0x420   :  { %v1752_v36 = vpop.f32.mrb[8].mxu1 }
 0x421   :  { %v467_v38 = vpop.f32.mrb[9].mxu1  ;;  %v488_v43 = vmul.f32 %v1945_v37, %v1752_v36 }
 0x422   :  { %v486_v40 = vmul.f32 %v1943_v35, %v467_v38  ;;  %v1753_v41 = vpop.f32.mrb[10].mxu1 }
 0x423   :  { %v489_v44 = vmul.f32 %v1947_v39, %v1753_v41  ;;  %v470_v45 = vpop.f32.mrb[11].mxu1  ;;  %v2155_v50 = vadd.f32 %v488_v43, %v2066_v10  ;;  %v1900_v10 = vld [vmem:[%s2358_s6 + $0x20] sm:$0xff]  }
 0x424   :  { %v487_v46 = vmul.f32 %v1949_v42, %v470_v45  ;;  %v2149_v48 = vadd.f32 %v486_v40, %v2048_v6  ;;  %v1898_v6 = vld [vmem:[%s2358_s6 + $0x10] sm:$0xff]  }
 0x425   :  { %v2146_v47 = vadd.f32 %v489_v44, %v2071_v11  ;;  %v1897_v11 = vld [vmem:[%s2358_s6 + $0x8] sm:$0xff]  }
 0x426   :  { %v2152_v49 = vadd.f32 %v487_v46, %v2053_v7  ;;  %v1899_v7 = vld [vmem:[%s2358_s6 + $0x18] sm:$0xff]  }
 0x427   :  { %v495_v52 = vpack.c.bf16 %v2146_v47, %v2155_v50 }
 0x428   :  { %v494_v51 = vpack.c.bf16 %v2152_v49, %v2149_v48 }
 0x42a   :  { %1760 = vmatprep.mubr.msk.bf16.mxu0 %vm105_vm0, %v494_v51  ;;  %v1558_v51 = vld [vmem:[%s2355_s1 + $0x20] sm:$0xff] }
 0x42b   :  { %1761 = vmatmul.mubr.msk.bf16.vlgmr.msra.gmra.mrb[12].mxu0 %vm105_vm0, %v495_v52 }
 0x42c   :  { %1765 = vmatpush3.bf16.msra.mxu0 %v1896_v30 }
 0x42d   :  { %1766 = vmatprep.subr.bf16.mxu0 %v1897_v11 }
 0x430   :  { %1767 = vmatpush3.bf16.msra.mxu0 %v1897_v11  ;;  %v1560_v11 = vld [vmem:[%s2355_s1 + $0x30] sm:$0xff] }
 0x431   :  { %1768 = vmatprep.subr.bf16.mxu0 %v1898_v6 }
 0x434   :  { %1769 = vmatpush3.bf16.msra.mxu0 %v1898_v6 }
 0x435   :  { %1770 = vmatprep.subr.bf16.mxu0 %v1899_v7 }
 0x438   :  { %1771 = vmatpush3.bf16.msra.mxu0 %v1899_v7  ;;  %v1559_v7 = vld [vmem:[%s2355_s1 + $0x28] sm:$0xff] }
 0x439   :  { %1772 = vmatprep.subr.bf16.mxu0 %v1900_v10 }
 0x43c   :  { %1773 = vmatpush3.bf16.msra.mxu0 %v1900_v10 }
 0x43d   :  { %1774 = vmatprep.subr.bf16.mxu0 %v1901_v53 }
 0x440   :  { %1775 = vmatpush3.bf16.msra.mxu0 %v1901_v53 }
 0x441   :  { %1780 = vmatprep.subr.bf16.mxu0 %v1905_v56 }
 0x4fe   :  { %v1762_v58 = vpop.f32.mrb[12].mxu0 }
 0x4ff   :  { %v576_v59 = vadd.f32 %v1762_v58, %v1518_v57  ;;  %v567_v60 = vpop.f32.mrb[13].mxu0 }
 0x500   :  { %v568_v61 = vadd.f32 %v1518_v57, %v567_v60  ;;  %v1763_v62 = vpop.f32.mrb[14].mxu0 }
 0x501   :  { %v579_v63 = vadd.f32 %v1763_v62, %v1518_v57  ;;  %v570_v0 = vpop.f32.mrb[15].mxu0  ;;  %v584_v3 = vmax.f32 %v576_v59, 0.0 }
 0x502   :  { %v571_v2 = vadd.f32 %v1518_v57, %v570_v0  ;;  %v582_v5 = vmax.f32 %v568_v61, 0.0 }
 0x503   :  { %v585_v4 = vmax.f32 %v579_v63, 0.0 }
 0x504   :  { %v583_v8 = vmax.f32 %v571_v2, 0.0 }
 0x505   :  { %v587_v9 = vpack.c.bf16 %v585_v4, %v584_v3 }
 0x506   :  { %v586_v12 = vpack.c.bf16 %v583_v8, %v582_v5 }
 0x508   :  { %1776 = vmatprep.mubr.msk.bf16.mxu0 %vm643_vm2, %v586_v12 }
 0x509   :  { %1777 = vmatmul.mubr.msk.bf16.vlgmr.msra.gmra.mrb[16].mxu0 %vm643_vm2, %v587_v9 }
 0x50a   :  { %1781 = vmatpush3.bf16.msra.mxu0 %v1905_v56 }
 0x50b   :  { %1782 = vmatprep.subr.bf16.mxu0 %v1909_v15 }
 0x50e   :  { %1783 = vmatpush3.bf16.msra.mxu0 %v1909_v15 }
 0x50f   :  { %1784 = vmatprep.subr.bf16.mxu0 %v1913_v18 }
 0x512   :  { %1785 = vmatpush3.bf16.msra.mxu0 %v1913_v18 }
 0x5dc   :  { %v1778_v20 = vpop.f32.mrb[16].mxu0 }
 0x5dd   :  { %v684_v21 = vpop.f32.mrb[17].mxu0  ;;  %v693_v24 = vadd.f32 %v1778_v20, %v1524_v19 }
 0x5de   :  { %v685_v22 = vadd.f32 %v1524_v19, %v684_v21  ;;  %v1779_v23 = vpop.f32.mrb[18].mxu0 }
 0x5df   :  { %v696_v25 = vadd.f32 %v1779_v23, %v1524_v19  ;;  %v687_v26 = vpop.f32.mrb[19].mxu0  ;;  %v2223_v31 = vadd.f32 %v693_v24, %v2155_v50 }
 0x5e0   :  { %v688_v27 = vadd.f32 %v1524_v19, %v687_v26  ;;  %v2217_v29 = vadd.f32 %v685_v22, %v2149_v48  ;;  %v1914_v26 = vld [vmem:[%s2356_s3 + $0x40] sm:$0xff]  }
 0x5e1   :  { %v2214_v28 = vadd.f32 %v696_v25, %v2146_v47 }
 0x5e2   :  { %v2220_v30 = vadd.f32 %v688_v27, %v2152_v49  ;;  %v1915_v27 = vld [vmem:[%s2356_s3 + $0x48] sm:$0xff]  }
 0x5e3   :  { %v704_v33 = vpack.c.bf16 %v2214_v28, %v2223_v31 }
 0x5e4   :  { %v703_v32 = vpack.c.bf16 %v2220_v30, %v2217_v29 }
 0x5e6   :  { %1554 = vmatmul.mubr.msk.bf16.vlgmr.msra.gmra.mrb[12].mxu1 %vm105_vm0, %v703_v32  ;;  %1786 = vmatprep.mubr.msk.bf16.mxu0 %vm105_vm0, %v703_v32  ;;  %v1916_v32 = vld [vmem:[%s2356_s3 + $0x50] sm:$0xff]  }
 0x5e7   :  { %1787 = vmatmul.mubr.msk.bf16.vlgmr.msra.gmra.mrb[20].mxu0 %vm105_vm0, %v704_v33  ;;  %814 = vmatprep.mubr.bf16.mxu1 %v1966_v1 }
 0x5ee   :  { %1555 = vmatmul.mubr.msk.bf16.gmra.mrb[16].mxu1 %vm105_vm0, %v704_v33  ;;  %v1917_v33 = vld [vmem:[%s2356_s3 + $0x58] sm:$0xff]  }
 0x6b9   :  { %v806_v34 = vpop.f32.mrb[12].mxu1 }
 0x6ba   :  { %v808_v35 = vpop.f32.mrb[13].mxu1  ;;  %v1788_v36 = vpop.f32.mrb[20].mxu0 }
 0x6bb   :  { %v810_v37 = vpop.f32.mrb[14].mxu1  ;;  %v859_v38 = vpop.f32.mrb[21].mxu0 }
 0x6bc   :  { %v874_v39 = vpack.c.bf16 %v810_v37, %v806_v34  ;;  %v812_v40 = vpop.f32.mrb[15].mxu1  ;;  %v1789_v41 = vpop.f32.mrb[22].mxu0  ;;  %v1918_v34 = vld [vmem:[%s2356_s3 + $0x60] sm:$0xff]   ;;  %v1921_v37 = vld [vmem:[%s2356_s3 + $0x78] sm:$0xff]  }
 0x6bd   :  { %v876_v42 = vpack.c.bf16 %v812_v40, %v808_v35  ;;  %v971_v43 = vpack.c.bf16 %v1789_v41, %v1788_v36  ;;  %v862_v44 = vpop.f32.mrb[23].mxu0  ;;  %v1919_v35 = vld [vmem:[%s2356_s3 + $0x68] sm:$0xff]   ;;  %v1920_v36 = vld [vmem:[%s2356_s3 + $0x70] sm:$0xff]  }
 0x6be   :  { %v970_v45 = vpack.c.bf16 %v862_v44, %v859_v38  ;;  %1794 = vmatprep.mubr.bf16.mxu1 %v874_v39  ;;  %v1922_v38 = vld [vmem:[%s2357_s4 + $0x18] sm:$0xff]  }
 0x6bf   :  { %1790 = vmatprep.subr.bf16.mxu1 %v876_v42  ;;  %1826 = vmatprep.subr.bf16.mxu0 %v1922_v38 }
 0x6c0   :  { %1791 = vmatpush3.bf16.xpose.msra.mxu1 %v876_v42  ;;  %1827 = vmatpush3.bf16.msra.mxu0 %v1922_v38 }
 0x6c1   :  { %v816_v46 = vpop.f32.mrb[16].mxu1 }
 0x6c2   :  { %v818_v47 = vpop.f32.mrb[17].mxu1 }
 0x6c3   :  { %v820_v1 = vpop.f32.mrb[18].mxu1 }
 0x6c4   :  { %v875_v48 = vpack.c.bf16 %v820_v1, %v816_v46  ;;  %v822_v49 = vpop.f32.mrb[19].mxu1  ;;  %v1924_v46 = vld [vmem:[%s2357_s4 + $0x28] sm:$0xff]  }
 0x6c5   :  { %v877_v50 = vpack.c.bf16 %v822_v49, %v818_v47  ;;  %v1925_v47 = vld [vmem:[%s2358_s6 + $0x30] sm:$0xff]  }
 0x6c7   :  { %1792 = vmatprep.subr.bf16.mxu1 %v877_v50 }
 0x6c8   :  { %1793 = vmatpush3.bf16.xpose.msra.mxu1 %v877_v50 }
 0x6c9   :  { %1798 = vmatprep.subr.bf16.mxu1 %v970_v45 }
 0x6cf   :  { %1795 = vmatmul.mubr.bf16.vlgmr.msra.gmra.mrb[20].mxu1 %v875_v48 }
 0x6d0   :  { %1799 = vmatpush3.bf16.msra.mxu1 %v970_v45  ;;  %v1923_v45 = vld [vmem:[%s2357_s4 + $0x20] sm:$0xff]  }
 0x6d1   :  { %1800 = vmatprep.subr.bf16.mxu1 %v971_v43  ;;  %1828 = vmatprep.subr.bf16.mxu0 %v1923_v45 }
 0x6d2   :  { %1829 = vmatpush3.bf16.msra.mxu0 %v1923_v45 }
 0x6d3   :  { %1830 = vmatprep.subr.bf16.mxu0 %v1924_v46 }
 0x6d4   :  { %1801 = vmatpush3.bf16.msra.mxu1 %v971_v43 }
 0x6d5   :  { %1806 = vmatprep.subr.bf16.mxu1 %v1914_v26 }
 0x6d6   :  { %1831 = vmatpush3.bf16.msra.mxu0 %v1924_v46  ;;  %v1933_v46 = vld [vmem:[%s2361_s8 + $0x10] sm:$0xff]  }
 0x6d7   :  { %1836 = vmatprep.subr.bf16.mxu0 %v1925_v47 }
 0x7a2   :  { %v1796_v52 = vpop.f32.mrb[20].mxu1 }
 0x7a3   :  { %v917_v6 = vpop.f32.mrb[21].mxu1  ;;  %v926_v56 = vadd.f32 %v1796_v52, %v1560_v11 }
 0x7a4   :  { %v918_v10 = vadd.f32 %v1558_v51, %v917_v6  ;;  %v1797_v53 = vpop.f32.mrb[22].mxu1 }
 0x7a5   :  { %v920_v55 = vpop.f32.mrb[23].mxu1  ;;  %v929_v59 = vadd.f32 %v1797_v53, %v1561_v54  ;;  %v938_v61 = vsel %vm271_vm1, %v926_v56, -inf }
 0x7a6   :  { %v921_v57 = vadd.f32 %v1559_v7, %v920_v55  ;;  %v932_v58 = vsel %vm271_vm1, %v918_v10, -inf }
 0x7a7   :  { %933 = vmax.xlane.f32.xlu0 %v932_v58  ;;  %v941_v62 = vsel %vm271_vm1, %v929_v59, -inf }
 0x7a8   :  { %v935_v60 = vsel %vm271_vm1, %v921_v57, -inf }
 0x7a9   :  { %936 = vmax.xlane.f32.xlu1 %v935_v60 }
 0x7ab   :  { %939 = vmax.xlane.f32.xlu0 %v938_v61 }
 0x7ad   :  { %942 = vmax.xlane.f32.xlu1 %v941_v62 }
 0x834   :  { %v934_v63 = vpop.xlane.xlu0 %933 }
 0x835   :  { %v944_v0 = vsub.f32 %v918_v10, %v934_v63 }
 0x836   :  { %v937_v2 = vpop.xlane.xlu1 %936 }
 0x837   :  { %v948_v3 = vmul.f32 1.442695, %v944_v0  ;;  %v945_v4 = vsub.f32 %v921_v57, %v937_v2  ;;  %v1926_v2 = vld [vmem:[%s2358_s6 + $0x38] sm:$0xff]  }
 0x838   :  { %v940_v5 = vpop.xlane.xlu0 %939 }
 0x839   :  { %1950 = vpow2.f32 %v948_v3  ;;  %v950_v8 = vmul.f32 1.442695, %v945_v4  ;;  %v946_v9 = vsub.f32 %v926_v56, %v940_v5  ;;  %v1595_v3 = vld [vmem:[%s2359_s5 + $0x1] ss:$0 sm:$0xff] }
 0x83a   :  { %v943_v12 = vpop.xlane.xlu1 %942 }
 0x83b   :  { %1952 = vpow2.f32 %v950_v8  ;;  %v952_v13 = vmul.f32 1.442695, %v946_v9  ;;  %v947_v14 = vsub.f32 %v929_v59, %v943_v12 }
 0x83d   :  { %1954 = vpow2.f32 %v952_v13  ;;  %v954_v15 = vmul.f32 1.442695, %v947_v14 }
 0x83f   :  { %1956 = vpow2.f32 %v954_v15 }
 0x843   :  { %v1951_v16 = vpop.eup %1950 }
 0x844   :  { %v956_v17 = vsel %vm271_vm1, %v1951_v16, 0.0 }
 0x845   :  { %v1953_v18 = vpop.eup %1952  ;;  %957 = vadd.xlane.f32.xlu0 %v956_v17 }
 0x846   :  { %v959_v19 = vsel %vm271_vm1, %v1953_v18, 0.0  ;;  %v968_v20 = vpack.c.bf16 %v1953_v18, %v1951_v16 }
 0x847   :  { %v1955_v21 = vpop.eup %1954  ;;  %960 = vadd.xlane.f32.xlu1 %v959_v19 }
 0x848   :  { %1802 = vmatprep.mubr.msk.bf16.mxu1 %vm271_vm1, %v968_v20  ;;  %v962_v22 = vsel %vm271_vm1, %v1955_v21, 0.0 }
 0x849   :  { %v1957_v23 = vpop.eup %1956  ;;  %963 = vadd.xlane.f32.xlu0 %v962_v22  ;;  %v1967_v22 = vmov 0.0  }
 0x84a   :  { %v965_v24 = vsel %vm271_vm1, %v1957_v23, 0.0  ;;  %v969_v25 = vpack.c.bf16 %v1957_v23, %v1955_v21  ;;  %v1931_v23 = vld [vmem:[%s2361_s8] sm:$0xff]  }
 0x84b   :  { %966 = vadd.xlane.f32.xlu1 %v965_v24  ;;  %v1932_v24 = vld [vmem:[%s2361_s8 + $0x8] sm:$0xff]  }
 0x84c   :  { %1803 = vmatmul.mubr.msk.bf16.vlgmr.msra.gmra.mrb[24].mxu1 %vm271_vm1, %v969_v25  ;;  %v1614_v25 = vld [vmem:[%s2360_s7 + $0x1] ss:$0 sm:$0xff] }
 0x84d   :  { %1807 = vmatpush3.bf16.msra.mxu1 %v1914_v26 }
 0x84e   :  { %1808 = vmatprep.subr.bf16.mxu1 %v1915_v27 }
 0x851   :  { %1809 = vmatpush3.bf16.msra.mxu1 %v1915_v27 }
 0x852   :  { %1810 = vmatprep.subr.bf16.mxu1 %v1916_v32 }
 0x855   :  { %1811 = vmatpush3.bf16.msra.mxu1 %v1916_v32 }
 0x856   :  { %1812 = vmatprep.subr.bf16.mxu1 %v1917_v33 }
 0x859   :  { %1813 = vmatpush3.bf16.msra.mxu1 %v1917_v33 }
 0x85a   :  { %1814 = vmatprep.subr.bf16.mxu1 %v1918_v34 }
 0x85d   :  { %1815 = vmatpush3.bf16.msra.mxu1 %v1918_v34 }
 0x85e   :  { %1816 = vmatprep.subr.bf16.mxu1 %v1919_v35 }
 0x861   :  { %1817 = vmatpush3.bf16.msra.mxu1 %v1919_v35 }
 0x862   :  { %1818 = vmatprep.subr.bf16.mxu1 %v1920_v36 }
 0x865   :  { %1819 = vmatpush3.bf16.msra.mxu1 %v1920_v36 }
 0x866   :  { %1820 = vmatprep.subr.bf16.mxu1 %v1921_v37 }
 0x869   :  { %1821 = vmatpush3.bf16.msra.mxu1 %v1921_v37 }
 0x86a   :  { %1852 = vmatprep.subr.bf16.mxu1 %v1967_v22 }
 0x8d2   :  { %v958_v1 = vpop.xlane.xlu0 %957 }
 0x8d3   :  { %1958 = vrcp.f32 %v958_v1 }
 0x8d4   :  { %v961_v48 = vpop.xlane.xlu1 %960 }
 0x8d6   :  { %v964_v49 = vpop.xlane.xlu0 %963 }
 0x8d7   :  { %1960 = vrcp.f32 %v964_v49 }
 0x8d8   :  { %v967_v50 = vpop.xlane.xlu1 %966 }
 0x8d9   :  { %1962 = vrcp.f32 %v967_v50 }
 0x8da   :  { %1964 = vrcp.f32 %v961_v48 }
 0x8dd   :  { %v1959_v51 = vpop.eup %1958 }
 0x8e1   :  { %v1961_v11 = vpop.eup %1960 }
 0x8e3   :  { %v1963_v7 = vpop.eup %1962 }
 0x8e4   :  { %v1965_v54 = vpop.eup %1964 }
 0x91f   :  { %v1804_v39 = vpop.f32.mrb[24].mxu1 }
 0x920   :  { %v1012_v40 = vpop.f32.mrb[25].mxu1 }
 0x921   :  { %v1805_v41 = vpop.f32.mrb[26].mxu1 }
 0x922   :  { %v1028_v42 = vpack.c.bf16 %v1805_v41, %v1804_v39  ;;  %v1015_v43 = vpop.f32.mrb[27].mxu1 }
 0x923   :  { %v1027_v44 = vpack.c.bf16 %v1015_v43, %v1012_v40 }
 0x925   :  { %1822 = vmatprep.mubr.bf16.mxu1 %v1027_v44  ;;  %v1367_v44 = vld [vmem:[%s2362_s10] sm:$0xf] }
 0x926   :  { %1823 = vmatmul.mubr.bf16.vlgmr.msra.gmra.mrb[28].mxu1 %v1028_v42  ;;  %v1368_v45 = vpack.c.bf16 %v1367_v44, %v1367_v44 }
 0x927   :  { %1856 = vmatprep.mubr.msk.bf16.mxu1 %vm1968_vm3, %v1967_v22 }
 0x9f9   :  { %v1824_v52 = vpop.f32.mrb[28].mxu1 }
 0x9fa   :  { %v1128_v6 = vpop.f32.mrb[29].mxu1  ;;  %v1149_v55 = vmul.f32 %v1961_v11, %v1824_v52 }
 0x9fb   :  { %v1147_v10 = vmul.f32 %v1959_v51, %v1128_v6  ;;  %v1825_v53 = vpop.f32.mrb[30].mxu1  ;;  %v1624_v51 = vld [vmem:[%s2363_s9] ss:$0 sm:$0xff] }
 0x9fc   :  { %v1150_v56 = vmul.f32 %v1963_v7, %v1825_v53  ;;  %v1131_v57 = vpop.f32.mrb[31].mxu1  ;;  %v1153_v62 = vadd.f32 %v1149_v55, %v2223_v31  ;;  %v1930_v31 = vld [vmem:[%s2358_s6 + $0x58] sm:$0xff]  }
 0x9fd   :  { %v1148_v58 = vmul.f32 %v1965_v54, %v1131_v57  ;;  %v2296_v60 = vadd.f32 %v1147_v10, %v2217_v29  ;;  %v1928_v29 = vld [vmem:[%s2358_s6 + $0x48] sm:$0xff]  }
 0x9fe   :  { %v2293_v59 = vadd.f32 %v1150_v56, %v2214_v28  ;;  %v1927_v28 = vld [vmem:[%s2358_s6 + $0x40] sm:$0xff]  }
 0x9ff   :  { %v2299_v61 = vadd.f32 %v1148_v58, %v2220_v30  ;;  %v1929_v30 = vld [vmem:[%s2358_s6 + $0x50] sm:$0xff]  }
 0xa00   :  { %v1156_v0 = vpack.c.bf16 %v2293_v59, %v1153_v62 }
 0xa01   :  { %v1155_v63 = vpack.c.bf16 %v2299_v61, %v2296_v60 }
 0xa03   :  { %1832 = vmatprep.mubr.msk.bf16.mxu0 %vm105_vm0, %v1155_v63 }
 0xa04   :  { %1833 = vmatmul.mubr.msk.bf16.vlgmr.msra.gmra.mrb[24].mxu0 %vm105_vm0, %v1156_v0 }
 0xa05   :  { %1837 = vmatpush3.bf16.msra.mxu0 %v1925_v47 }
 0xa06   :  { %1838 = vmatprep.subr.bf16.mxu0 %v1926_v2 }
 0xa09   :  { %1839 = vmatpush3.bf16.msra.mxu0 %v1926_v2 }
 0xa0a   :  { %1840 = vmatprep.subr.bf16.mxu0 %v1927_v28 }
 0xa0d   :  { %1841 = vmatpush3.bf16.msra.mxu0 %v1927_v28 }
 0xa0e   :  { %1842 = vmatprep.subr.bf16.mxu0 %v1928_v29 }
 0xa11   :  { %1843 = vmatpush3.bf16.msra.mxu0 %v1928_v29 }
 0xa12   :  { %1844 = vmatprep.subr.bf16.mxu0 %v1929_v30 }
 0xa15   :  { %1845 = vmatpush3.bf16.msra.mxu0 %v1929_v30 }
 0xa16   :  { %1846 = vmatprep.subr.bf16.mxu0 %v1930_v31 }
 0xa19   :  { %1847 = vmatpush3.bf16.msra.mxu0 %v1930_v31 }
 0xa1a   :  { %1860 = vmatprep.subr.bf16.mxu0 %v1967_v22 }
 0xad7   :  { %v1834_v4 = vpop.f32.mrb[24].mxu0 }
 0xad8   :  { %v1239_v5 = vadd.f32 %v1834_v4, %v1595_v3  ;;  %v1230_v8 = vpop.f32.mrb[25].mxu0 }
 0xad9   :  { %v1231_v9 = vadd.f32 %v1595_v3, %v1230_v8  ;;  %v1835_v12 = vpop.f32.mrb[26].mxu0 }
 0xada   :  { %v1242_v13 = vadd.f32 %v1835_v12, %v1595_v3  ;;  %v1233_v14 = vpop.f32.mrb[27].mxu0  ;;  %v1247_v16 = vmax.f32 %v1239_v5, 0.0 }
 0xadb   :  { %v1234_v15 = vadd.f32 %v1595_v3, %v1233_v14  ;;  %v1245_v18 = vmax.f32 %v1231_v9, 0.0 }
 0xadc   :  { %v1248_v17 = vmax.f32 %v1242_v13, 0.0 }
 0xadd   :  { %v1246_v19 = vmax.f32 %v1234_v15, 0.0 }
 0xade   :  { %v1250_v20 = vpack.c.bf16 %v1248_v17, %v1247_v16 }
 0xadf   :  { %v1249_v21 = vpack.c.bf16 %v1246_v19, %v1245_v18 }
 0xae1   :  { %1848 = vmatprep.mubr.msk.bf16.mxu0 %vm643_vm2, %v1249_v21 }
 0xae2   :  { %1849 = vmatmul.mubr.msk.bf16.vlgmr.msra.gmra.mrb[28].mxu0 %vm643_vm2, %v1250_v20 }
 0xae3   :  { %1866 = vmatprep.mubr.msk.bf16.mxu0 %vm1968_vm3, %v1967_v22  ;;  %1861 = vmatpush3.bf16.msra.mxu0 %v1931_v23 }
 0xae4   :  { %1862 = vmatprep.subr.bf16.mxu0 %v1967_v22 }
 0xae7   :  { %1863 = vmatpush3.bf16.msra.mxu0 %v1932_v24 }
 0xae8   :  { %1864 = vmatprep.subr.bf16.mxu0 %v1967_v22 }
 0xaeb   :  { %1865 = vmatpush3.bf16.msra.mxu0 %v1933_v46 }
 0xbb5   :  { %v1850_v26 = vpop.f32.mrb[28].mxu0 }
 0xbb6   :  { %v1357_v27 = vadd.f32 %v1850_v26, %v1614_v25  ;;  %v1348_v32 = vpop.f32.mrb[29].mxu0 }
 0xbb7   :  { %v1349_v33 = vadd.f32 %v1614_v25, %v1348_v32  ;;  %v1851_v34 = vpop.f32.mrb[30].mxu0 }
 0xbb8   :  { %v1360_v35 = vadd.f32 %v1851_v34, %v1614_v25  ;;  %v1351_v36 = vpop.f32.mrb[31].mxu0  ;;  %v1365_v38 = vadd.f32 %v1357_v27, %v1153_v62 }
 0xbb9   :  { %v1352_v37 = vadd.f32 %v1614_v25, %v1351_v36  ;;  %v1363_v40 = vadd.f32 %v1349_v33, %v2296_v60 }
 0xbba   :  { %v1366_v39 = vadd.f32 %v1360_v35, %v2293_v59 }
 0xbbb   :  { %v1364_v41 = vadd.f32 %v1352_v37, %v2299_v61 }
 0xbbc   :  { %v1370_v42 = vpack.c.bf16 %v1366_v39, %v1365_v38 }
 0xbbd   :  { %v1369_v43 = vpack.c.bf16 %v1364_v41, %v1363_v40 }
 0xbbf   :  { %1853 = vmatpush3.bf16.msra.mxu1 %v1369_v43 }
 0xbc0   :  { %1854 = vmatprep.subr.bf16.mxu1 %v1967_v22 }
 0xbc3   :  { %1855 = vmatpush3.bf16.msra.mxu1 %v1370_v42 }
 0xbc6   :  { %1857 = vmatmul.mubr.msk.bf16.vlgmr.msra.gmra.mrb[32].mxu1 %vm271_vm1, %v1368_v45 }
 0xc99   :  { %v1408_v47 = vpop.f32.mrb[32].mxu1 }
 0xc9a   :  { %v1414_v1 = vpack.c.bf16 %v1408_v47, %v1408_v47  ;;  %v1858_v48 = vpop.f32.mrb[33].mxu1 }
 0xc9b   :  { %v1411_v49 = vpop.f32.mrb[34].mxu1 }
 0xc9c   :  { %v1859_v50 = vpop.f32.mrb[35].mxu1  ;;  %1867 = vmatmul.mubr.msk.bf16.vlgmr.msra.gmra.mrb[32].mxu0 %vm105_vm0, %v1414_v1 }
 0xd6f   :  { %v1483_v52 = vpop.f32.mrb[32].mxu0 }
 0xd70   :  { %v1484_v11 = vadd.f32 %v1624_v51, %v1483_v52  ;;  %v1868_v6 = vpop.f32.mrb[33].mxu0 }
 0xd71   :  { %v1486_v7 = vpop.f32.mrb[34].mxu0 }
 0xd72   :  { %1490 = vst.msk [vmem:[%s2364_s11] sm:$0xf] %vm1489_vm4, %v1484_v11  ;;  %v1869_v10 = vpop.f32.mrb[35].mxu0 }

</bundles_post_ra>
